<compile_context>
chip_gen: v6e
topology: v6e:2x2x1
jax: 0.10.0
libtpu: 0.0.40
codegen_flags: <defaults>
</compile_context>

<pallas_src>
import functools

import jax
import jax.numpy as jnp
from jax.experimental import pallas as pl
from jax.experimental.pallas import tpu as pltpu


def _round_up(x: int, m: int) -> int:
    return ((x + m - 1) // m) * m


def _supports_bf16_eup() -> bool:
    """True on chips with a bf16 VPU/EUP path (v6e, v7x); False on v2-v5."""
    try:
        kind = jax.devices()[0].device_kind.lower()
    except Exception:  # pragma: no cover - conservative fallback
        return False
    return not any(tag in kind for tag in ("v2", "v3", "v4", "v5"))


def _choose_batch_tiling(B: int, batch_tile: int):
    """Pick (B_pad, TB, n_tiles) with sublane-aligned tiles, >=2 even grid
    steps when B >= 32 (v7x megacore), and minimal batch padding."""
    B16 = _round_up(B, 16)                      # bf16 sublane packing
    n_tiles = pl.cdiv(B16, batch_tile)
    if B16 >= 32:
        n_tiles = max(n_tiles, 2)               # both v7x TensorCores get work
        if n_tiles % 2:
            n_tiles += 1                        # even split balances the cores
    TB = _round_up(pl.cdiv(B16, n_tiles), 16)   # near-equal tiles, <16 pad rows/tile
    B_pad = n_tiles * TB
    return B_pad, TB, n_tiles


def _vmem_limit_bytes(TB: int, H_pad: int, L_pad: int, out_itemsize: int) -> int:
    """Right-sized VMEM limit: actual footprint * 1.5 + 4 MiB headroom."""
    bf16, f32 = 2, 4
    x_tiles = 2 * TB * H_pad * bf16            # streamed, double-buffered
    out_tiles = 2 * TB * L_pad * out_itemsize  # streamed, double-buffered
    weights = H_pad * H_pad * bf16 + H_pad * L_pad * bf16   # single-buffered
    biases = (H_pad + L_pad) * f32
    footprint = x_tiles + out_tiles + weights + biases
    limit = int(footprint * 1.5) + (4 << 20)
    return max(16 << 20, min(limit, 48 << 20))


def _resident_spec(shape):
    """BlockSpec for a VMEM-resident operand (constant index_map).

    Single-buffered: the data never changes across grid steps, so a second
    pipeline buffer would only waste VMEM.
    """
    index_map = lambda i: (0,) * len(shape)
    try:
        return pl.BlockSpec(shape, index_map, pipeline_mode=pl.Buffered(1))
    except (TypeError, AttributeError):  # older JAX without pipeline_mode
        return pl.BlockSpec(shape, index_map)


def _head_kernel(x_ref, w1_ref, b1_ref, w2_ref, b2_ref, o_ref, *, tanh_bf16):
    # dense: [TB,H] @ [H,H] -> bf16 operands, f32 accumulation on the MXU.
    h = jnp.dot(x_ref[...], w1_ref[...], preferred_element_type=jnp.float32)
    h = h + b1_ref[...]
    # TODO(synk): dropout is identity in eval mode; training-mode dropout
    # (pltpu.prng_random_bits mask) intentionally omitted.
    if tanh_bf16:
        # v6e/v7x: bf16 EUP path (~2x transcendental throughput); the result
        # is needed as bf16 for the second matmul anyway.
        h = jnp.tanh(h.astype(jnp.bfloat16))
    else:
        # v5e: no bf16 VPU/EUP -> keep tanh in f32, cast afterwards.
        h = jnp.tanh(h).astype(jnp.bfloat16)
    # out_proj: [TB,H] @ [H,L_pad] -> lane-dense (L_pad % 128 == 0) output.
    out = jnp.dot(h, w2_ref[...], preferred_element_type=jnp.float32)
    o_ref[...] = (out + b2_ref[...]).astype(o_ref.dtype)


def wav2vec2_classification_head(features, w1, b1, w2, b2, *, batch_tile=1024):
    """features: [B, H]; w1: [H, H]; b1: [H]; w2: [H, L]; b2: [L].

    Weights are [in, out] (i.e. already transposed vs. nn.Linear storage).
    """
    B, H = features.shape
    L = w2.shape[1]
    out_dtype = features.dtype

    # Lane-dense hidden and output dims.
    H_pad = _round_up(H, 128)
    L_pad = _round_up(L, 128)
    B_pad, TB, n_tiles = _choose_batch_tiling(B, batch_tile)

    # Activations streamed as bf16 (halves x-stream HBM bytes); zero padding.
    x_p = features.astype(jnp.bfloat16)
    if B_pad != B or H_pad != H:
        x_p = jnp.pad(x_p, ((0, B_pad - B), (0, H_pad - H)))

    # bf16 weights (halve weight DMA bytes); zero pads guarantee padded hidden
    # lanes are tanh(0)=0 and padded logit lanes are exactly 0 (no leakage).
    w1_bf = jnp.pad(w1, ((0, H_pad - H), (0, H_pad - H))).astype(jnp.bfloat16)
    w2_bf = jnp.pad(w2, ((0, H_pad - H), (0, L_pad - L))).astype(jnp.bfloat16)
    b1_2d = jnp.pad(b1, (0, H_pad - H)).reshape(1, H_pad).astype(jnp.float32)
    b2_2d = jnp.pad(b2, (0, L_pad - L)).reshape(1, L_pad).astype(jnp.float32)

    tanh_bf16 = _supports_bf16_eup()
    kernel = functools.partial(_head_kernel, tanh_bf16=tanh_bf16)

    def _build(single_buffer_weights: bool):
        if single_buffer_weights:
            make_resident = _resident_spec
        else:
            make_resident = lambda s: pl.BlockSpec(s, lambda i: (0,) * len(s))
        return pl.pallas_call(
            kernel,
            out_shape=jax.ShapeDtypeStruct((B_pad, L_pad), out_dtype),
            grid=(n_tiles,),
            in_specs=[
                pl.BlockSpec((TB, H_pad), lambda i: (i, 0)),   # x: streamed
                make_resident((H_pad, H_pad)),                 # w1: resident
                make_resident((1, H_pad)),                     # b1: resident
                make_resident((H_pad, L_pad)),                 # w2: resident
                make_resident((1, L_pad)),                     # b2: resident
            ],
            out_specs=pl.BlockSpec((TB, L_pad), lambda i: (i, 0)),
            compiler_params=pltpu.CompilerParams(
                dimension_semantics=("parallel",),
                vmem_limit_bytes=_vmem_limit_bytes(
                    TB, H_pad, L_pad, jnp.dtype(out_dtype).itemsize),
            ),
        )

    try:
        out_padded = _build(True)(x_p, w1_bf, b1_2d, w2_bf, b2_2d)
    except Exception:
        # Safety net: fall back to default (double-buffered) resident specs if
        # Buffered(1) is rejected by this JAX/Mosaic version.
        out_padded = _build(False)(x_p, w1_bf, b1_2d, w2_bf, b2_2d)

    # Slice away batch + label padding outside the kernel.
    return out_padded[:B, :L]


def _reference_like_kernel(features, w1, b1, w2, b2, tanh_bf16):
    """Mirrors the kernel's precision recipe: bf16 operands, f32 accumulation."""
    xb = features.astype(jnp.bfloat16)
    h = jnp.dot(xb, w1.astype(jnp.bfloat16),
                preferred_element_type=jnp.float32) + b1.astype(jnp.float32)
    if tanh_bf16:
        hb = jnp.tanh(h.astype(jnp.bfloat16))
    else:
        hb = jnp.tanh(h).astype(jnp.bfloat16)
    return jnp.dot(hb, w2.astype(jnp.bfloat16),
                   preferred_element_type=jnp.float32) + b2


def _reference_f32(features, w1, b1, w2, b2):
    h = jnp.tanh(features @ w1 + b1)
    return h @ w2 + b2


if __name__ == "__main__":
    # Small deterministic setup consistent with the module:
    # config.hidden_size -> H, config.num_labels -> L.
    B, H, L = 8, 32, 8

    key = jax.random.PRNGKey(0)
    k_x, k_w1, k_b1, k_w2, k_b2 = jax.random.split(key, 5)

    features = jax.random.normal(k_x, (B, H), dtype=jnp.float32)
    # nn.Linear stores weight as [out, in]; we keep [in, out] so the kernel
    # computes x @ W directly (equivalent to x @ weight.T).
    w1 = jax.random.normal(k_w1, (H, H), dtype=jnp.float32) * 0.05
    b1 = jax.random.normal(k_b1, (H,), dtype=jnp.float32) * 0.05
    w2 = jax.random.normal(k_w2, (H, L), dtype=jnp.float32) * 0.05
    b2 = jax.random.normal(k_b2, (L,), dtype=jnp.float32) * 0.05

    out = wav2vec2_classification_head(features, w1, b1, w2, b2)
    out = jax.block_until_ready(out)
    assert out.shape == (B, L), out.shape

    # Tight check vs. a reference following the same precision recipe
    # (bf16 operands, f32 accumulation, same tanh dtype).
    ref_k = _reference_like_kernel(features, w1, b1, w2, b2,
                                   _supports_bf16_eup())
    assert jnp.allclose(out, ref_k, atol=2e-3, rtol=2e-3), \
        "mismatch vs kernel-precision reference"

    # Loose sanity check vs. the pure-f32 PyTorch-equivalent forward.
    ref_f32 = _reference_f32(features, w1, b1, w2, b2)
    assert jnp.allclose(out, ref_f32, atol=2e-2, rtol=2e-2), \
        "mismatch vs f32 reference"

    print("KERNEL_OK")
</pallas_src>

<mosaic_0001>
module attributes {stable_mosaic.version = 11 : i64} {
  func.func @_head_kernel(%arg0: i32, %arg1: memref<16x128xbf16, #tpu.memory_space<vmem>>, %arg2: memref<128x128xbf16, #tpu.memory_space<vmem>>, %arg3: memref<1x128xf32, #tpu.memory_space<vmem>>, %arg4: memref<128x128xbf16, #tpu.memory_space<vmem>>, %arg5: memref<1x128xf32, #tpu.memory_space<vmem>>, %arg6: memref<16x128xf32, #tpu.memory_space<vmem>>) attributes {dimension_semantics = [#tpu.dimension_semantics<parallel>], iteration_bounds = array<i64: 1>, scalar_prefetch = 0 : i64, scratch_operands = 0 : i64, tpu.core_type = #tpu.core_type<tc>, window_params = [{transform_indices = @transform_0, window_bounds = array<i64: 16, 128>}, {pipeline_mode = #tpu.pipeline_mode<synchronous>, transform_indices = @transform_1, window_bounds = array<i64: 128, 128>}, {pipeline_mode = #tpu.pipeline_mode<synchronous>, transform_indices = @transform_2, window_bounds = array<i64: 1, 128>}, {pipeline_mode = #tpu.pipeline_mode<synchronous>, transform_indices = @transform_3, window_bounds = array<i64: 128, 128>}, {pipeline_mode = #tpu.pipeline_mode<synchronous>, transform_indices = @transform_4, window_bounds = array<i64: 1, 128>}, {transform_indices = @transform_5, window_bounds = array<i64: 16, 128>}]} {
    %c0 = arith.constant 0 : index
    %c0_0 = arith.constant 0 : index
    %0 = vector.load %arg1[%c0, %c0_0] : memref<16x128xbf16, #tpu.memory_space<vmem>>, vector<16x128xbf16>
    %c0_1 = arith.constant 0 : index
    %c0_2 = arith.constant 0 : index
    %1 = vector.load %arg2[%c0_1, %c0_2] : memref<128x128xbf16, #tpu.memory_space<vmem>>, vector<128x128xbf16>
    %cst = arith.constant dense<0.000000e+00> : vector<16x128xf32>
    %2 = tpu.matmul %0, %1, %cst {dimension_numbers = #tpu.dot_dimension_numbers<[1], [0], [0], [1], [0, 0, 1, 1], [], []>} : vector<16x128xbf16>, vector<128x128xbf16>, vector<16x128xf32> -> vector<16x128xf32>
    %c0_3 = arith.constant 0 : index
    %c0_4 = arith.constant 0 : index
    %3 = vector.load %arg3[%c0_3, %c0_4] : memref<1x128xf32, #tpu.memory_space<vmem>>, vector<1x128xf32>
    %4 = vector.broadcast %3 : vector<1x128xf32> to vector<16x128xf32>
    %5 = arith.addf %2, %4 : vector<16x128xf32>
    %6 = arith.truncf %5 : vector<16x128xf32> to vector<16x128xbf16>
    %7 = math.tanh %6 : vector<16x128xbf16>
    %c0_5 = arith.constant 0 : index
    %c0_6 = arith.constant 0 : index
    %8 = vector.load %arg4[%c0_5, %c0_6] : memref<128x128xbf16, #tpu.memory_space<vmem>>, vector<128x128xbf16>
    %cst_7 = arith.constant dense<0.000000e+00> : vector<16x128xf32>
    %9 = tpu.matmul %7, %8, %cst_7 {dimension_numbers = #tpu.dot_dimension_numbers<[1], [0], [0], [1], [0, 0, 1, 1], [], []>} : vector<16x128xbf16>, vector<128x128xbf16>, vector<16x128xf32> -> vector<16x128xf32>
    %c0_8 = arith.constant 0 : index
    %c0_9 = arith.constant 0 : index
    %10 = vector.load %arg5[%c0_8, %c0_9] : memref<1x128xf32, #tpu.memory_space<vmem>>, vector<1x128xf32>
    %11 = vector.broadcast %10 : vector<1x128xf32> to vector<16x128xf32>
    %12 = arith.addf %9, %11 : vector<16x128xf32>
    %c0_10 = arith.constant 0 : index
    %c0_11 = arith.constant 0 : index
    %13 = vector.load %arg6[%c0_10, %c0_11] : memref<16x128xf32, #tpu.memory_space<vmem>>, vector<16x128xf32>
    tpu.vector_store %arg6[%c0_10, %c0_11], %12 {strides = array<i32>} : memref<16x128xf32, #tpu.memory_space<vmem>>, vector<16x128xf32>,
    return
  }
  func.func @transform_0(%arg0: i32) -> (i32, i32) {
    %c0_i32 = arith.constant 0 : i32
    %c0_i32_0 = arith.constant 0 : i32
    return %arg0, %c0_i32 : i32, i32
  }
  func.func @transform_1(%arg0: i32) -> (i32, i32) {
    %c0_i32 = arith.constant 0 : i32
    %c0_i32_0 = arith.constant 0 : i32
    %c0_i32_1 = arith.constant 0 : i32
    return %c0_i32, %c0_i32_0 : i32, i32
  }
  func.func @transform_2(%arg0: i32) -> (i32, i32) {
    %c0_i32 = arith.constant 0 : i32
    %c0_i32_0 = arith.constant 0 : i32
    %c0_i32_1 = arith.constant 0 : i32
    return %c0_i32, %c0_i32_0 : i32, i32
  }
  func.func @transform_3(%arg0: i32) -> (i32, i32) {
    %c0_i32 = arith.constant 0 : i32
    %c0_i32_0 = arith.constant 0 : i32
    %c0_i32_1 = arith.constant 0 : i32
    return %c0_i32, %c0_i32_0 : i32, i32
  }
  func.func @transform_4(%arg0: i32) -> (i32, i32) {
    %c0_i32 = arith.constant 0 : i32
    %c0_i32_0 = arith.constant 0 : i32
    %c0_i32_1 = arith.constant 0 : i32
    return %c0_i32, %c0_i32_0 : i32, i32
  }
  func.func @transform_5(%arg0: i32) -> (i32, i32) {
    %c0_i32 = arith.constant 0 : i32
    %c0_i32_0 = arith.constant 0 : i32
    return %arg0, %c0_i32 : i32, i32
  }
}

module attributes {stable_mosaic.version = 11 : i64} {
  func.func @_head_kernel(%arg0: i32, %arg1: memref<16x128xbf16, #tpu.memory_space<vmem>>, %arg2: memref<128x128xbf16, #tpu.memory_space<vmem>>, %arg3: memref<1x128xf32, #tpu.memory_space<vmem>>, %arg4: memref<128x128xbf16, #tpu.memory_space<vmem>>, %arg5: memref<1x128xf32, #tpu.memory_space<vmem>>, %arg6: memref<16x128xf32, #tpu.memory_space<vmem>>) attributes {dimension_semantics = [#tpu.dimension_semantics<parallel>], iteration_bounds = array<i64: 1>, scalar_prefetch = 0 : i64, scratch_operands = 0 : i64, tpu.core_type = #tpu.core_type<tc>, window_params = [{transform_indices = @transform_0, window_bounds = array<i64: 16, 128>}, {pipeline_mode = #tpu.pipeline_mode<synchronous>, transform_indices = @transform_1, window_bounds = array<i64: 128, 128>}, {pipeline_mode = #tpu.pipeline_mode<synchronous>, transform_indices = @transform_2, window_bounds = array<i64: 1, 128>}, {pipeline_mode = #tpu.pipeline_mode<synchronous>, transform_indices = @transform_3, window_bounds = array<i64: 128, 128>}, {pipeline_mode = #tpu.pipeline_mode<synchronous>, transform_indices = @transform_4, window_bounds = array<i64: 1, 128>}, {transform_indices = @transform_5, window_bounds = array<i64: 16, 128>}]} {
    %c0 = arith.constant 0 : index
    %c0_0 = arith.constant 0 : index
    %0 = vector.load %arg1[%c0, %c0_0] : memref<16x128xbf16, #tpu.memory_space<vmem>>, vector<16x128xbf16>
    %c0_1 = arith.constant 0 : index
    %c0_2 = arith.constant 0 : index
    %1 = vector.load %arg2[%c0_1, %c0_2] : memref<128x128xbf16, #tpu.memory_space<vmem>>, vector<128x128xbf16>
    %cst = arith.constant dense<0.000000e+00> : vector<16x128xf32>
    %2 = tpu.matmul %0, %1, %cst {dimension_numbers = #tpu.dot_dimension_numbers<[1], [0], [0], [1], [0, 0, 1, 1], [], []>} : vector<16x128xbf16>, vector<128x128xbf16>, vector<16x128xf32> -> vector<16x128xf32>
    %c0_3 = arith.constant 0 : index
    %c0_4 = arith.constant 0 : index
    %3 = vector.load %arg3[%c0_3, %c0_4] : memref<1x128xf32, #tpu.memory_space<vmem>>, vector<1x128xf32>
    %4 = vector.broadcast %3 : vector<1x128xf32> to vector<16x128xf32>
    %5 = arith.addf %2, %4 : vector<16x128xf32>
    %6 = arith.truncf %5 : vector<16x128xf32> to vector<16x128xbf16>
    %7 = math.tanh %6 : vector<16x128xbf16>
    %c0_5 = arith.constant 0 : index
    %c0_6 = arith.constant 0 : index
    %8 = vector.load %arg4[%c0_5, %c0_6] : memref<128x128xbf16, #tpu.memory_space<vmem>>, vector<128x128xbf16>
    %cst_7 = arith.constant dense<0.000000e+00> : vector<16x128xf32>
    %9 = tpu.matmul %7, %8, %cst_7 {dimension_numbers = #tpu.dot_dimension_numbers<[1], [0], [0], [1], [0, 0, 1, 1], [], []>} : vector<16x128xbf16>, vector<128x128xbf16>, vector<16x128xf32> -> vector<16x128xf32>
    %c0_8 = arith.constant 0 : index
    %c0_9 = arith.constant 0 : index
    %10 = vector.load %arg5[%c0_8, %c0_9] : memref<1x128xf32, #tpu.memory_space<vmem>>, vector<1x128xf32>
    %11 = vector.broadcast %10 : vector<1x128xf32> to vector<16x128xf32>
    %12 = arith.addf %9, %11 : vector<16x128xf32>
    %c0_10 = arith.constant 0 : index
    %c0_11 = arith.constant 0 : index
    %13 = vector.load %arg6[%c0_10, %c0_11] : memref<16x128xf32, #tpu.memory_space<vmem>>, vector<16x128xf32>
    tpu.vector_store %arg6[%c0_10, %c0_11], %12 {strides = array<i32>} : memref<16x128xf32, #tpu.memory_space<vmem>>, vector<16x128xf32>,
    return
  }
  func.func @transform_0(%arg0: i32) -> (i32, i32) {
    %c0_i32 = arith.constant 0 : i32
    %c0_i32_0 = arith.constant 0 : i32
    return %arg0, %c0_i32 : i32, i32
  }
  func.func @transform_1(%arg0: i32) -> (i32, i32) {
    %c0_i32 = arith.constant 0 : i32
    %c0_i32_0 = arith.constant 0 : i32
    %c0_i32_1 = arith.constant 0 : i32
    return %c0_i32, %c0_i32_0 : i32, i32
  }
  func.func @transform_2(%arg0: i32) -> (i32, i32) {
    %c0_i32 = arith.constant 0 : i32
    %c0_i32_0 = arith.constant 0 : i32
    %c0_i32_1 = arith.constant 0 : i32
    return %c0_i32, %c0_i32_0 : i32, i32
  }
  func.func @transform_3(%arg0: i32) -> (i32, i32) {
    %c0_i32 = arith.constant 0 : i32
    %c0_i32_0 = arith.constant 0 : i32
    %c0_i32_1 = arith.constant 0 : i32
    return %c0_i32, %c0_i32_0 : i32, i32
  }
  func.func @transform_4(%arg0: i32) -> (i32, i32) {
    %c0_i32 = arith.constant 0 : i32
    %c0_i32_0 = arith.constant 0 : i32
    %c0_i32_1 = arith.constant 0 : i32
    return %c0_i32, %c0_i32_0 : i32, i32
  }
  func.func @transform_5(%arg0: i32) -> (i32, i32) {
    %c0_i32 = arith.constant 0 : i32
    %c0_i32_0 = arith.constant 0 : i32
    return %arg0, %c0_i32 : i32, i32
  }
}

</mosaic_0001>

<bundles_post_ra>
// kernel: tpu_custom_call.1
= control target key start
LH: loop header
LB: loop body
LE: loop exit
PB: predicated region body
PF: predicated region fallthrough
CT: control target
= control target key end

     0   :  { %10 = vsyncpa [#allocation3], 0  ;;  %s567_s0 = inlined_call_operand.hbm [shape: bf16[16,128], index: 0, kind: input, shape index: {}]   ;;  %s568_s1 = inlined_call_operand.hbm [shape: bf16[128,128], index: 1, kind: input, shape index: {}]   ;;  %s569_s2 = inlined_call_operand.vmem [shape: f32[1,128], index: 2, kind: input, shape index: {}]   ;;  %s570_s3 = inlined_call_operand.hbm [shape: bf16[128,128], index: 3, kind: input, shape index: {}]   ;;  %s571_s4 = inlined_call_operand.vmem [shape: f32[1,128], index: 4, kind: input, shape index: {}]   ;;  %s572_s5 = inlined_call_operand.hbm [shape: f32[16,128], index: 5, kind: output, shape index: {}]  }
   0x1   :  { %11 = vsyncpa [#allocation6], 0 }
   0x2   :  { %12 = vsyncpa [#allocation4], 0  ;;  %s509_s18 = smov [#allocation5]   ;;  %s510_s20 = smov [#allocation2]  }
   0x3   :  { %s30_s19 = sshll.u32 %s509_s18, 4  ;;  %s18_s21 = sshll.u32 %s510_s20, 4  ;;  %s31_s19 = int_to_ptr.vmem [resolvable:$true] %s30_s19  ;;  %s19_s21 = int_to_ptr.vmem [resolvable:$true] %s18_s21 }
   0x4   :  { %s431_s22 = scalar_lea.vmem %s31_s19, 1024  ;;  %p436_p1 = scmp.lt.s32.totalorder %s31_s19, %s31_s19 }
   0x5   :  { %p432_p0 = scmp.ne.s32.totalorder %s31_s19, %s431_s22  ;;  %p437_p2 = scmp.lt.s32.totalorder %s431_s22, %s431_s22 }
   0x7   :  { %p438_p3 = por %p437_p2, %p436_p1 }
   0x9   :  { %p439_p4 = pnand %p438_p3, %p432_p0 }
   0xb   :  { %442 = shalt.err (!%p439_p4)
}
   0xc   :  { %s511_s23 = smov 64   ;;  %s512_s24 = smov 4  }
   0xd   :  { %36 = dma.hbm_to_vmem [thread:$0]  %s568_s1, 1024, %s31_s19, [#allocation6], %s511_s23, %s511_s23, %s512_s24  }
   0xe   :  { %s451_s27 = scalar_lea.vmem %s19_s21, 128  ;;  %p456_p6 = scmp.lt.s32.totalorder %s19_s21, %s19_s21 }
   0xf   :  { %p452_p5 = scmp.ne.s32.totalorder %s19_s21, %s451_s27  ;;  %p457_p7 = scmp.lt.s32.totalorder %s451_s27, %s451_s27 }
  0x11   :  { %p458_p8 = por %p457_p7, %p456_p6 }
  0x13   :  { %p459_p9 = pnand %p458_p8, %p452_p5 }
  0x15   :  { %462 = shalt.err (!%p459_p9)
}
  0x16   :  { %24 = dma.hbm_to_vmem [thread:$0]  %s567_s0, 128, %s19_s21, [#allocation3], %s511_s23, %s511_s23, %s512_s24  }
  0x17   :  { %s513_s30 = smov [#allocation7]  }
  0x18   :  { %s44_s6 = sshll.u32 %s513_s30, 4  ;;  %s45_s6 = int_to_ptr.vmem [resolvable:$true] %s44_s6 }
  0x19   :  { %s471_s7 = scalar_lea.vmem %s45_s6, 1024  ;;  %p476_p11 = scmp.lt.s32.totalorder %s45_s6, %s45_s6 }
  0x1a   :  { %p472_p10 = scmp.ne.s32.totalorder %s45_s6, %s471_s7  ;;  %p477_p12 = scmp.lt.s32.totalorder %s471_s7, %s471_s7 }
  0x1c   :  { %p478_p13 = por %p477_p12, %p476_p11 }
  0x1e   :  { %p479_p0 = pnand %p478_p13, %p472_p10 }
  0x20   :  { %482 = shalt.err (!%p479_p0)
}
  0x21   :  { %50 = dma.hbm_to_vmem [thread:$0]  %s570_s3, 1024, %s45_s6, [#allocation6], %s511_s23, %s511_s23, %s512_s24  }
  0x22   :  { %503 = dma.done.wait [#allocation3], 128  }
  0x23   :  { %504 = vsyncadd [#allocation3], 4294967168 }
  0x24   :  { %505 = dma.done.wait [#allocation6], 2048  }
  0x25   :  { %506 = vsyncadd [#allocation6], 4294965248  ;;  %v514_v0 = vmov 0.0   ;;  %vm515_vm0 = vmmov 0   ;;  %v404_v1 = vld [vmem:[#allocation5 + $0x38] sm:$0xff]   ;;  %v405_v2 = vld [vmem:[#allocation5 + $0x30] sm:$0xff]  }
  0x26   :  { %354 = vmatprep.subr.bf16.mxu0 %v514_v0  ;;  %370 = vmatprep.mubr.msk.bf16.mxu0 %vm515_vm0, %v514_v0  ;;  %v406_v3 = vld [vmem:[#allocation5 + $0x28] sm:$0xff]   ;;  %v413_v4 = vld [vmem:[#allocation7 + $0x38] sm:$0xff]   ;;  %v407_v5 = vld [vmem:[#allocation5 + $0x20] sm:$0xff]   ;;  %s516_s11 = smov [#allocation8]  }
  0x27   :  { %374 = vmatprep.subr.bf16.mxu1 %v514_v0  ;;  %390 = vmatprep.mubr.msk.bf16.mxu1 %vm515_vm0, %v514_v0  ;;  %v414_v6 = vld [vmem:[#allocation7 + $0x30] sm:$0xff]   ;;  %v408_v7 = vld [vmem:[#allocation5 + $0x18] sm:$0xff]   ;;  %v410_v9 = vld [vmem:[#allocation5 + $0x8] sm:$0xff]   ;;  %s304_s12 = sshll.u32 %s516_s11, 4  ;;  %s305_s12 = int_to_ptr.vmem [resolvable:$true] %s304_s12 }
  0x28   :  { %355 = vmatpush3.bf16.msra.mxu0 %v404_v1  ;;  %375 = vmatpush3.bf16.msra.mxu1 %v413_v4  ;;  %v409_v8 = vld [vmem:[#allocation5 + $0x10] sm:$0xff]   ;;  %v411_v10 = vld [vmem:[#allocation5] sm:$0xff]   ;;  %v412_v11 = vld [vmem:[#allocation2] sm:$0xff]   ;;  %p488_p2 = scmp.lt.s32.totalorder %s305_s12, %s305_s12 }
  0x29   :  { %356 = vmatprep.subr.bf16.mxu0 %v514_v0  ;;  %376 = vmatprep.subr.bf16.mxu1 %v514_v0  ;;  %v415_v12 = vld [vmem:[#allocation7 + $0x28] sm:$0xff]   ;;  %v416_v13 = vld [vmem:[#allocation7 + $0x20] sm:$0xff]   ;;  %v417_v14 = vld [vmem:[#allocation7 + $0x18] sm:$0xff]  }
  0x2a   :  { %v418_v15 = vld [vmem:[#allocation7 + $0x10] sm:$0xff]   ;;  %v419_v16 = vld [vmem:[#allocation7 + $0x8] sm:$0xff]   ;;  %v420_v17 = vld [vmem:[#allocation7] sm:$0xff]  }
  0x2b   :  { %v317_v19 = vld [vmem:[%s569_s2] ss:$0 sm:$0xff]  ;;  %s483_s2 = scalar_lea.vmem %s305_s12, 256 }
  0x2c   :  { %357 = vmatpush3.bf16.msra.mxu0 %v405_v2  ;;  %377 = vmatpush3.bf16.msra.mxu1 %v414_v6  ;;  %v327_v27 = vld [vmem:[%s571_s4] ss:$0 sm:$0xff]  ;;  %p484_p1 = scmp.ne.s32.totalorder %s305_s12, %s483_s2  ;;  %p489_p3 = scmp.lt.s32.totalorder %s483_s2, %s483_s2 }
  0x2d   :  { %358 = vmatprep.subr.bf16.mxu0 %v514_v0  ;;  %378 = vmatprep.subr.bf16.mxu1 %v514_v0 }
  0x2e   :  { %p490_p4 = por %p489_p3, %p488_p2 }
  0x30   :  { %359 = vmatpush3.bf16.msra.mxu0 %v406_v3  ;;  %379 = vmatpush3.bf16.msra.mxu1 %v415_v12  ;;  %p491_p5 = pnand %p490_p4, %p484_p1 }
  0x31   :  { %360 = vmatprep.subr.bf16.mxu0 %v514_v0  ;;  %380 = vmatprep.subr.bf16.mxu1 %v514_v0 }
  0x34   :  { %361 = vmatpush3.bf16.msra.mxu0 %v407_v5  ;;  %381 = vmatpush3.bf16.msra.mxu1 %v416_v13 }
  0x35   :  { %362 = vmatprep.subr.bf16.mxu0 %v514_v0  ;;  %382 = vmatprep.subr.bf16.mxu1 %v514_v0 }
  0x38   :  { %363 = vmatpush3.bf16.msra.mxu0 %v408_v7  ;;  %383 = vmatpush3.bf16.msra.mxu1 %v417_v14 }
  0x39   :  { %364 = vmatprep.subr.bf16.mxu0 %v514_v0  ;;  %384 = vmatprep.subr.bf16.mxu1 %v514_v0 }
  0x3c   :  { %365 = vmatpush3.bf16.msra.mxu0 %v409_v8  ;;  %385 = vmatpush3.bf16.msra.mxu1 %v418_v15 }
  0x3d   :  { %366 = vmatprep.subr.bf16.mxu0 %v514_v0  ;;  %386 = vmatprep.subr.bf16.mxu1 %v514_v0 }
  0x40   :  { %367 = vmatpush3.bf16.msra.mxu0 %v410_v9  ;;  %387 = vmatpush3.bf16.msra.mxu1 %v419_v16 }
  0x41   :  { %368 = vmatprep.subr.bf16.mxu0 %v514_v0  ;;  %388 = vmatprep.subr.bf16.mxu1 %v514_v0 }
  0x44   :  { %369 = vmatpush3.bf16.msra.mxu0 %v411_v10  ;;  %389 = vmatpush3.bf16.msra.mxu1 %v420_v17 }
  0x47   :  { %371 = vmatmul.mubr.bf16.vlgmr.msra.gmra.mxu0 %v412_v11 }
 0x107   :  { %v176_v18 = vpop.f32.mrf.mxu0 }
 0x108   :  { %v177_v22 = vadd.f32 %v317_v19, %v176_v18 }
 0x109   :  { %v372_v20 = vpop.f32.mrf.mxu0 }
 0x10b   :  { %v179_v21 = vpop.f32.mrf.mxu0 }
 0x10c   :  { %v180_v23 = vadd.f32 %v317_v19, %v179_v21 }
 0x10d   :  { %v373_v24 = vpop.f32.mrf.mxu0 }
 0x10e   :  { %v183_v25 = vpack.c.bf16 %v180_v23, %v177_v22 }
 0x110   :  { %421 = vtanh.bf16 %v183_v25 }
 0x11e   :  { %v422_v26 = vpop.eup %421 }
 0x11f   :  { %391 = vmatmul.mubr.bf16.vlgmr.msra.gmra.mxu1 %v422_v26 }
 0x1df   :  { %v290_v28 = vpop.f32.mrf.mxu1 }
 0x1e0   :  { %v291_v29 = vadd.f32 %v327_v27, %v290_v28 }
 0x1e1   :  { %v392_v30 = vpop.f32.mrf.mxu1 }
 0x1e2   :  { %297 = vst [vmem:[#allocation8] sm:$0xff] %v291_v29 }
 0x1e3   :  { %v293_v31 = vpop.f32.mrf.mxu1 }
 0x1e4   :  { %v294_v32 = vadd.f32 %v327_v27, %v293_v31 }
 0x1e5   :  { %v393_v33 = vpop.f32.mrf.mxu1 }
 0x1e6   :  { %298 = vst [vmem:[#allocation8 + $0x8] sm:$0xff] %v294_v32 }
 0x1e7   :  { %494 = shalt.err (!%p491_p5)
}
 0x1e8   :  { %s517_s13 = smov 128   ;;  %s518_s4 = smov 8  }
 0x1e9   :  { %310 = dma.vmem_to_hbm [thread:$0]  %s305_s12, 256, %s572_s5, [#allocation4], %s517_s13, %s517_s13, %s518_s4  }
 0x1ea   :  { %507 = dma.done.wait [#allocation4], 256  }
 0x1eb   :  { %508 = vsyncadd [#allocation4], 4294967040 }
 0x1ec   :  { %314 = vsyncpa [#allocation3], 1 }
 0x1ed   :  { %315 = vsyncpa [#allocation6], 1 }
 0x1ee   :  { %316 = vsyncpa [#allocation4], 1 }

// kernel: tpu_custom_call.1
= control target key start
LH: loop header
LB: loop body
LE: loop exit
PB: predicated region body
PF: predicated region fallthrough
CT: control target
= control target key end

     0   :  { %10 = vsyncpa [#allocation3], 0  ;;  %s567_s0 = inlined_call_operand.hbm [shape: bf16[16,128], index: 0, kind: input, shape index: {}]   ;;  %s568_s1 = inlined_call_operand.hbm [shape: bf16[128,128], index: 1, kind: input, shape index: {}]   ;;  %s569_s2 = inlined_call_operand.vmem [shape: f32[1,128], index: 2, kind: input, shape index: {}]   ;;  %s570_s3 = inlined_call_operand.hbm [shape: bf16[128,128], index: 3, kind: input, shape index: {}]   ;;  %s571_s4 = inlined_call_operand.vmem [shape: f32[1,128], index: 4, kind: input, shape index: {}]   ;;  %s572_s5 = inlined_call_operand.hbm [shape: f32[16,128], index: 5, kind: output, shape index: {}]  }
   0x1   :  { %11 = vsyncpa [#allocation6], 0 }
   0x2   :  { %12 = vsyncpa [#allocation4], 0  ;;  %s509_s18 = smov [#allocation5]   ;;  %s510_s20 = smov [#allocation2]  }
   0x3   :  { %s30_s19 = sshll.u32 %s509_s18, 4  ;;  %s18_s21 = sshll.u32 %s510_s20, 4  ;;  %s31_s19 = int_to_ptr.vmem [resolvable:$true] %s30_s19  ;;  %s19_s21 = int_to_ptr.vmem [resolvable:$true] %s18_s21 }
   0x4   :  { %s431_s22 = scalar_lea.vmem %s31_s19, 1024  ;;  %p436_p1 = scmp.lt.s32.totalorder %s31_s19, %s31_s19 }
   0x5   :  { %p432_p0 = scmp.ne.s32.totalorder %s31_s19, %s431_s22  ;;  %p437_p2 = scmp.lt.s32.totalorder %s431_s22, %s431_s22 }
   0x7   :  { %p438_p3 = por %p437_p2, %p436_p1 }
   0x9   :  { %p439_p4 = pnand %p438_p3, %p432_p0 }
   0xb   :  { %442 = shalt.err (!%p439_p4)
}
   0xc   :  { %s511_s23 = smov 64   ;;  %s512_s24 = smov 4  }
   0xd   :  { %36 = dma.hbm_to_vmem [thread:$0]  %s568_s1, 1024, %s31_s19, [#allocation6], %s511_s23, %s511_s23, %s512_s24  }
   0xe   :  { %s451_s27 = scalar_lea.vmem %s19_s21, 128  ;;  %p456_p6 = scmp.lt.s32.totalorder %s19_s21, %s19_s21 }
   0xf   :  { %p452_p5 = scmp.ne.s32.totalorder %s19_s21, %s451_s27  ;;  %p457_p7 = scmp.lt.s32.totalorder %s451_s27, %s451_s27 }
  0x11   :  { %p458_p8 = por %p457_p7, %p456_p6 }
  0x13   :  { %p459_p9 = pnand %p458_p8, %p452_p5 }
  0x15   :  { %462 = shalt.err (!%p459_p9)
}
  0x16   :  { %24 = dma.hbm_to_vmem [thread:$0]  %s567_s0, 128, %s19_s21, [#allocation3], %s511_s23, %s511_s23, %s512_s24  }
  0x17   :  { %s513_s30 = smov [#allocation7]  }
  0x18   :  { %s44_s6 = sshll.u32 %s513_s30, 4  ;;  %s45_s6 = int_to_ptr.vmem [resolvable:$true] %s44_s6 }
  0x19   :  { %s471_s7 = scalar_lea.vmem %s45_s6, 1024  ;;  %p476_p11 = scmp.lt.s32.totalorder %s45_s6, %s45_s6 }
  0x1a   :  { %p472_p10 = scmp.ne.s32.totalorder %s45_s6, %s471_s7  ;;  %p477_p12 = scmp.lt.s32.totalorder %s471_s7, %s471_s7 }
  0x1c   :  { %p478_p13 = por %p477_p12, %p476_p11 }
  0x1e   :  { %p479_p0 = pnand %p478_p13, %p472_p10 }
  0x20   :  { %482 = shalt.err (!%p479_p0)
}
  0x21   :  { %50 = dma.hbm_to_vmem [thread:$0]  %s570_s3, 1024, %s45_s6, [#allocation6], %s511_s23, %s511_s23, %s512_s24  }
  0x22   :  { %503 = dma.done.wait [#allocation3], 128  }
  0x23   :  { %504 = vsyncadd [#allocation3], 4294967168 }
  0x24   :  { %505 = dma.done.wait [#allocation6], 2048  }
  0x25   :  { %506 = vsyncadd [#allocation6], 4294965248  ;;  %v514_v0 = vmov 0.0   ;;  %vm515_vm0 = vmmov 0   ;;  %v404_v1 = vld [vmem:[#allocation5 + $0x38] sm:$0xff]   ;;  %v405_v2 = vld [vmem:[#allocation5 + $0x30] sm:$0xff]  }
  0x26   :  { %354 = vmatprep.subr.bf16.mxu0 %v514_v0  ;;  %370 = vmatprep.mubr.msk.bf16.mxu0 %vm515_vm0, %v514_v0  ;;  %v406_v3 = vld [vmem:[#allocation5 + $0x28] sm:$0xff]   ;;  %v413_v4 = vld [vmem:[#allocation7 + $0x38] sm:$0xff]   ;;  %v407_v5 = vld [vmem:[#allocation5 + $0x20] sm:$0xff]   ;;  %s516_s11 = smov [#allocation8]  }
  0x27   :  { %374 = vmatprep.subr.bf16.mxu1 %v514_v0  ;;  %390 = vmatprep.mubr.msk.bf16.mxu1 %vm515_vm0, %v514_v0  ;;  %v414_v6 = vld [vmem:[#allocation7 + $0x30] sm:$0xff]   ;;  %v408_v7 = vld [vmem:[#allocation5 + $0x18] sm:$0xff]   ;;  %v410_v9 = vld [vmem:[#allocation5 + $0x8] sm:$0xff]   ;;  %s304_s12 = sshll.u32 %s516_s11, 4  ;;  %s305_s12 = int_to_ptr.vmem [resolvable:$true] %s304_s12 }
  0x28   :  { %355 = vmatpush3.bf16.msra.mxu0 %v404_v1  ;;  %375 = vmatpush3.bf16.msra.mxu1 %v413_v4  ;;  %v409_v8 = vld [vmem:[#allocation5 + $0x10] sm:$0xff]   ;;  %v411_v10 = vld [vmem:[#allocation5] sm:$0xff]   ;;  %v412_v11 = vld [vmem:[#allocation2] sm:$0xff]   ;;  %p488_p2 = scmp.lt.s32.totalorder %s305_s12, %s305_s12 }
  0x29   :  { %356 = vmatprep.subr.bf16.mxu0 %v514_v0  ;;  %376 = vmatprep.subr.bf16.mxu1 %v514_v0  ;;  %v415_v12 = vld [vmem:[#allocation7 + $0x28] sm:$0xff]   ;;  %v416_v13 = vld [vmem:[#allocation7 + $0x20] sm:$0xff]   ;;  %v417_v14 = vld [vmem:[#allocation7 + $0x18] sm:$0xff]  }
  0x2a   :  { %v418_v15 = vld [vmem:[#allocation7 + $0x10] sm:$0xff]   ;;  %v419_v16 = vld [vmem:[#allocation7 + $0x8] sm:$0xff]   ;;  %v420_v17 = vld [vmem:[#allocation7] sm:$0xff]  }
  0x2b   :  { %v317_v19 = vld [vmem:[%s569_s2] ss:$0 sm:$0xff]  ;;  %s483_s2 = scalar_lea.vmem %s305_s12, 256 }
  0x2c   :  { %357 = vmatpush3.bf16.msra.mxu0 %v405_v2  ;;  %377 = vmatpush3.bf16.msra.mxu1 %v414_v6  ;;  %v327_v27 = vld [vmem:[%s571_s4] ss:$0 sm:$0xff]  ;;  %p484_p1 = scmp.ne.s32.totalorder %s305_s12, %s483_s2  ;;  %p489_p3 = scmp.lt.s32.totalorder %s483_s2, %s483_s2 }
  0x2d   :  { %358 = vmatprep.subr.bf16.mxu0 %v514_v0  ;;  %378 = vmatprep.subr.bf16.mxu1 %v514_v0 }
  0x2e   :  { %p490_p4 = por %p489_p3, %p488_p2 }
  0x30   :  { %359 = vmatpush3.bf16.msra.mxu0 %v406_v3  ;;  %379 = vmatpush3.bf16.msra.mxu1 %v415_v12  ;;  %p491_p5 = pnand %p490_p4, %p484_p1 }
  0x31   :  { %360 = vmatprep.subr.bf16.mxu0 %v514_v0  ;;  %380 = vmatprep.subr.bf16.mxu1 %v514_v0 }
  0x34   :  { %361 = vmatpush3.bf16.msra.mxu0 %v407_v5  ;;  %381 = vmatpush3.bf16.msra.mxu1 %v416_v13 }
  0x35   :  { %362 = vmatprep.subr.bf16.mxu0 %v514_v0  ;;  %382 = vmatprep.subr.bf16.mxu1 %v514_v0 }
  0x38   :  { %363 = vmatpush3.bf16.msra.mxu0 %v408_v7  ;;  %383 = vmatpush3.bf16.msra.mxu1 %v417_v14 }
  0x39   :  { %364 = vmatprep.subr.bf16.mxu0 %v514_v0  ;;  %384 = vmatprep.subr.bf16.mxu1 %v514_v0 }
  0x3c   :  { %365 = vmatpush3.bf16.msra.mxu0 %v409_v8  ;;  %385 = vmatpush3.bf16.msra.mxu1 %v418_v15 }
  0x3d   :  { %366 = vmatprep.subr.bf16.mxu0 %v514_v0  ;;  %386 = vmatprep.subr.bf16.mxu1 %v514_v0 }
  0x40   :  { %367 = vmatpush3.bf16.msra.mxu0 %v410_v9  ;;  %387 = vmatpush3.bf16.msra.mxu1 %v419_v16 }
  0x41   :  { %368 = vmatprep.subr.bf16.mxu0 %v514_v0  ;;  %388 = vmatprep.subr.bf16.mxu1 %v514_v0 }
  0x44   :  { %369 = vmatpush3.bf16.msra.mxu0 %v411_v10  ;;  %389 = vmatpush3.bf16.msra.mxu1 %v420_v17 }
  0x47   :  { %371 = vmatmul.mubr.bf16.vlgmr.msra.gmra.mxu0 %v412_v11 }
 0x107   :  { %v176_v18 = vpop.f32.mrf.mxu0 }
 0x108   :  { %v177_v22 = vadd.f32 %v317_v19, %v176_v18 }
 0x109   :  { %v372_v20 = vpop.f32.mrf.mxu0 }
 0x10b   :  { %v179_v21 = vpop.f32.mrf.mxu0 }
 0x10c   :  { %v180_v23 = vadd.f32 %v317_v19, %v179_v21 }
 0x10d   :  { %v373_v24 = vpop.f32.mrf.mxu0 }
 0x10e   :  { %v183_v25 = vpack.c.bf16 %v180_v23, %v177_v22 }
 0x110   :  { %421 = vtanh.bf16 %v183_v25 }
 0x11e   :  { %v422_v26 = vpop.eup %421 }
 0x11f   :  { %391 = vmatmul.mubr.bf16.vlgmr.msra.gmra.mxu1 %v422_v26 }
 0x1df   :  { %v290_v28 = vpop.f32.mrf.mxu1 }
 0x1e0   :  { %v291_v29 = vadd.f32 %v327_v27, %v290_v28 }
 0x1e1   :  { %v392_v30 = vpop.f32.mrf.mxu1 }
 0x1e2   :  { %297 = vst [vmem:[#allocation8] sm:$0xff] %v291_v29 }
 0x1e3   :  { %v293_v31 = vpop.f32.mrf.mxu1 }
 0x1e4   :  { %v294_v32 = vadd.f32 %v327_v27, %v293_v31 }
 0x1e5   :  { %v393_v33 = vpop.f32.mrf.mxu1 }
 0x1e6   :  { %298 = vst [vmem:[#allocation8 + $0x8] sm:$0xff] %v294_v32 }
 0x1e7   :  { %494 = shalt.err (!%p491_p5)
}
 0x1e8   :  { %s517_s13 = smov 128   ;;  %s518_s4 = smov 8  }
 0x1e9   :  { %310 = dma.vmem_to_hbm [thread:$0]  %s305_s12, 256, %s572_s5, [#allocation4], %s517_s13, %s517_s13, %s518_s4  }
 0x1ea   :  { %507 = dma.done.wait [#allocation4], 256  }
 0x1eb   :  { %508 = vsyncadd [#allocation4], 4294967040 }
 0x1ec   :  { %314 = vsyncpa [#allocation3], 1 }
 0x1ed   :  { %315 = vsyncpa [#allocation6], 1 }
 0x1ee   :  { %316 = vsyncpa [#allocation4], 1 }

</bundles_post_ra>
